<compile_context>
chip_gen: v7x
topology: tpu7x:2x2x1
jax: 0.10.0
libtpu: 0.0.40
codegen_flags: <defaults>
</compile_context>

<pallas_src>
import jax
import jax.numpy as jnp
from jax import lax
from jax.experimental import pallas as pl
from jax.experimental.pallas import tpu as pltpu

N_LAYERS = 5
BN_EPS = 1e-5
LANE = 128


def make_tcs_kernel(kernel_size, inv_count):
    pad = kernel_size // 2

    def tcs_kernel(x_ref, w_ref, gamma_ref, beta_ref, valid_ref, tap_ref, out_ref):
        # x_ref/out_ref: (C, P) slab (P = N*L padded to a multiple of 128)
        # w_ref:         (N_LAYERS*K, C, C) fused per-tap depthwise+pointwise weights
        # gamma/beta:    (N_LAYERS, C, 1)   BatchNorm affine params
        # valid_ref:     (P, 1)  1.0 on real (batch,time) lanes, 0.0 on padding
        # tap_ref:       (K, 1, P) per-tap masks (zero where the lane roll would
        #                cross a sample boundary == the conv's zero padding)
        x = x_ref[...].astype(jnp.float32)
        p_lanes = x.shape[1]
        valid_col = valid_ref[...]                                   # (P, 1)
        # Hoisted once (JAX does not CSE broadcast_in_dim).
        tap_masks = [None if (k - pad) == 0 else tap_ref[k]
                     for k in range(kernel_size)]

        h = x
        for layer in range(N_LAYERS):
            # Grouped depthwise + pointwise conv as K small MXU dots accumulated
            # in registers -- no (K*C, P) concat slab, no extra vst traffic.
            y = None
            for k in range(kernel_size):
                d = k - pad
                if d == 0:
                    piece = h
                else:
                    piece = pltpu.roll(h, (-d) % p_lanes, axis=1) * tap_masks[k]
                part = jnp.dot(w_ref[layer * kernel_size + k], piece,
                               preferred_element_type=jnp.float32)   # (C, P)
                y = part if y is None else y + part

            # BatchNorm1d (train mode, biased stats) + ReLU, fused.
            # Per-channel sum / sum-of-squares on the (otherwise idle) MXU;
            # the validity column zeroes the padded lanes inside the reduction.
            s1 = jnp.dot(y, valid_col, preferred_element_type=jnp.float32)       # (C, 1)
            s2 = jnp.dot(y * y, valid_col, preferred_element_type=jnp.float32)   # (C, 1)
            mean = s1 * inv_count
            var = jnp.maximum(s2 * inv_count - mean * mean, 0.0)
            scale = gamma_ref[layer] * lax.rsqrt(var + BN_EPS)
            shift = beta_ref[layer] - mean * scale
            h = jnp.maximum(y * scale + shift, 0.0)

        out_ref[...] = (h + x).astype(out_ref.dtype)   # residual

    return tcs_kernel


def expand_grouped_weight(dw, groups):
    """(layers, C_out, C_in//groups, K) -> (layers, K, C_out, C_in) block-diagonal."""
    n_layers, c_out, cg, k = dw.shape
    c_in = cg * groups
    co = jnp.arange(c_out)
    ci = (co // (c_out // groups))[:, None] * cg + jnp.arange(cg)[None, :]  # (C_out, cg)
    full = jnp.zeros((n_layers, k, c_out, c_in), dw.dtype)
    full = full.at[:, :, co[:, None], ci].set(jnp.transpose(dw, (0, 3, 1, 2)))
    return full


def fuse_weights(dw, pw, groups):
    """Fold pointwise into depthwise: returns (layers*K, C_out, C_in) per-tap matrices."""
    wdw = expand_grouped_weight(dw, groups)                  # (L, K, C, C)
    w_eff = jnp.einsum('lab,lkbc->lkac', pw, wdw)            # (L, K, C_out, C_in)
    n_layers, k, c_out, c_in = w_eff.shape
    return w_eff.reshape(n_layers * k, c_out, c_in)


def tcs_block_forward(x, w_taps, gamma, beta, kernel_size, io_dtype=jnp.float32):
    # x: (N, C, L) float32 (PyTorch NCL layout)
    n, c, length = x.shape
    pad = kernel_size // 2
    nl = n * length
    p_lanes = ((nl + LANE - 1) // LANE) * LANE

    # (C, P) activation slab, zero-padded to a lane-dense width.
    x2d = jnp.transpose(x, (1, 0, 2)).reshape(c, nl)
    x2d = jnp.pad(x2d, ((0, 0), (0, p_lanes - nl))).astype(io_dtype)

    # Boundary / validity masks, precomputed host-side (tiny).
    lane = jnp.arange(p_lanes)
    l_idx = lane % length
    in_batch = lane < nl
    valid_col = in_batch.astype(jnp.float32)[:, None]                  # (P, 1)
    taps = []
    for k in range(kernel_size):
        d = k - pad
        src = l_idx + d
        taps.append(((src >= 0) & (src < length) & in_batch).astype(jnp.float32))
    tap_mask = jnp.stack(taps)[:, None, :]                             # (K, 1, P)

    # Explicit VMEM budget: a handful of (C, P) f32 slabs + weights/masks,
    # with headroom.  Keeps us honest on v7x's 64 MiB physical VMEM.
    slab_bytes = c * p_lanes * 4
    vmem_limit = int(max(16 << 20, 12 * slab_bytes + (1 << 20)))

    kernel_fn = make_tcs_kernel(kernel_size, 1.0 / float(nl))
    out2d = pl.pallas_call(
        kernel_fn,
        out_shape=jax.ShapeDtypeStruct((c, p_lanes), io_dtype),
        in_specs=[pl.BlockSpec(memory_space=pltpu.MemorySpace.VMEM)] * 6,
        out_specs=pl.BlockSpec(memory_space=pltpu.MemorySpace.VMEM),
        compiler_params=pltpu.CompilerParams(vmem_limit_bytes=vmem_limit),
    )(x2d, w_taps, gamma, beta, valid_col, tap_mask)
    out2d = out2d.astype(jnp.float32)
    return out2d[:, :nl].reshape(c, n, length).transpose(1, 0, 2)


def tcs_block_reference(x, dw, pw, gamma, beta, kernel, groups):
    """Pure-JAX reference mirroring the PyTorch forward (train-mode BN)."""
    h = x
    p = kernel // 2
    for layer in range(N_LAYERS):
        z = lax.conv_general_dilated(
            h, dw[layer], window_strides=(1,), padding=[(p, p)],
            dimension_numbers=('NCH', 'OIH', 'NCH'), feature_group_count=groups)
        y = lax.conv_general_dilated(
            z, pw[layer][:, :, None], window_strides=(1,), padding=[(0, 0)],
            dimension_numbers=('NCH', 'OIH', 'NCH'))
        mean = jnp.mean(y, axis=(0, 2), keepdims=True)
        var = jnp.mean((y - mean) ** 2, axis=(0, 2), keepdims=True)
        y = (y - mean) / jnp.sqrt(var + BN_EPS)
        y = y * gamma[layer][None, :, :] + beta[layer][None, :, :]
        h = jnp.maximum(y, 0.0)
    return h + x


if __name__ == "__main__":
    # TCSBlock(in_channels=8, out_channels=8, kernel=3)  (residual requires in==out,
    # groups=4 requires channels % 4 == 0)
    N, C, L, K, GROUPS = 2, 8, 16, 3, 4

    key = jax.random.PRNGKey(0)
    kx, kd, kp = jax.random.split(key, 3)
    x = jax.random.normal(kx, (N, C, L), dtype=jnp.float32)

    # Deterministic parameters (PyTorch shapes):
    #  depthwise_conv.weight: (C, C//groups, K)  per layer
    #  pointwise_conv.weight: (C, C, 1) -> (C, C) per layer
    #  batch_norm.weight = 1, batch_norm.bias = 0 (default init)
    dw = 0.3 * jax.random.normal(kd, (N_LAYERS, C, C // GROUPS, K), dtype=jnp.float32)
    pw = 0.3 * jax.random.normal(kp, (N_LAYERS, C, C), dtype=jnp.float32)
    gamma = jnp.ones((N_LAYERS, C, 1), jnp.float32)
    beta = jnp.zeros((N_LAYERS, C, 1), jnp.float32)

    w_taps = fuse_weights(dw, pw, GROUPS)

    out = jax.block_until_ready(tcs_block_forward(x, w_taps, gamma, beta, K))

    ref = tcs_block_reference(x, dw, pw, gamma, beta, K, GROUPS)
    assert out.shape == (N, C, L)
    err = float(jnp.max(jnp.abs(out - ref)))
    assert jnp.allclose(out, ref, atol=1e-4, rtol=1e-4), err
    print("KERNEL_OK")
</pallas_src>

<mosaic_0001>
module attributes {stable_mosaic.version = 11 : i64} {
  func.func @tcs_kernel(%arg0: memref<8x128xf32, #tpu.memory_space<vmem>>, %arg1: memref<15x8x8xf32, #tpu.memory_space<vmem>>, %arg2: memref<5x8x1xf32, #tpu.memory_space<vmem>>, %arg3: memref<5x8x1xf32, #tpu.memory_space<vmem>>, %arg4: memref<128x1xf32, #tpu.memory_space<vmem>>, %arg5: memref<3x1x128xf32, #tpu.memory_space<vmem>>, %arg6: memref<8x128xf32, #tpu.memory_space<vmem>>) attributes {dimension_semantics = [], scalar_prefetch = 0 : i64, scratch_operands = 0 : i64, tpu.core_type = #tpu.core_type<tc>} {
    %c0 = arith.constant 0 : index
    %c0_0 = arith.constant 0 : index
    %0 = vector.load %arg0[%c0, %c0_0] : memref<8x128xf32, #tpu.memory_space<vmem>>, vector<8x128xf32>
    %c0_1 = arith.constant 0 : index
    %c0_2 = arith.constant 0 : index
    %1 = vector.load %arg4[%c0_1, %c0_2] : memref<128x1xf32, #tpu.memory_space<vmem>>, vector<128x1xf32>
    %c0_3 = arith.constant 0 : index
    %c0_4 = arith.constant 0 : index
    %c0_5 = arith.constant 0 : index
    %2 = vector.load %arg5[%c0_3, %c0_4, %c0_5] : memref<3x1x128xf32, #tpu.memory_space<vmem>>, vector<1x1x128xf32>
    %3 = vector.shape_cast %2 : vector<1x1x128xf32> to vector<1x128xf32>
    %c2 = arith.constant 2 : index
    %c0_6 = arith.constant 0 : index
    %c0_7 = arith.constant 0 : index
    %4 = vector.load %arg5[%c2, %c0_6, %c0_7] : memref<3x1x128xf32, #tpu.memory_space<vmem>>, vector<1x1x128xf32>
    %5 = vector.shape_cast %4 : vector<1x1x128xf32> to vector<1x128xf32>
    %c1_i32 = arith.constant 1 : i32
    %6 = tpu.dynamic_rotate %0 by %c1_i32 dim 1 : vector<8x128xf32>, i32 -> vector<8x128xf32>
    %7 = vector.broadcast %3 : vector<1x128xf32> to vector<8x128xf32>
    %8 = arith.mulf %6, %7 : vector<8x128xf32>
    %c0_8 = arith.constant 0 : index
    %c0_9 = arith.constant 0 : index
    %c0_10 = arith.constant 0 : index
    %9 = vector.load %arg1[%c0_8, %c0_9, %c0_10] : memref<15x8x8xf32, #tpu.memory_space<vmem>>, vector<1x8x8xf32>
    %10 = vector.shape_cast %9 : vector<1x8x8xf32> to vector<8x8xf32>
    %cst = arith.constant dense<0.000000e+00> : vector<8x128xf32>
    %11 = tpu.matmul %10, %8, %cst {dimension_numbers = #tpu.dot_dimension_numbers<[1], [0], [0], [1], [0, 0, 1, 1], [], []>} : vector<8x8xf32>, vector<8x128xf32>, vector<8x128xf32> -> vector<8x128xf32>
    %c1 = arith.constant 1 : index
    %c0_11 = arith.constant 0 : index
    %c0_12 = arith.constant 0 : index
    %12 = vector.load %arg1[%c1, %c0_11, %c0_12] : memref<15x8x8xf32, #tpu.memory_space<vmem>>, vector<1x8x8xf32>
    %13 = vector.shape_cast %12 : vector<1x8x8xf32> to vector<8x8xf32>
    %cst_13 = arith.constant dense<0.000000e+00> : vector<8x128xf32>
    %14 = tpu.matmul %13, %0, %cst_13 {dimension_numbers = #tpu.dot_dimension_numbers<[1], [0], [0], [1], [0, 0, 1, 1], [], []>} : vector<8x8xf32>, vector<8x128xf32>, vector<8x128xf32> -> vector<8x128xf32>
    %15 = arith.addf %11, %14 : vector<8x128xf32>
    %c127_i32 = arith.constant 127 : i32
    %16 = tpu.dynamic_rotate %0 by %c127_i32 dim 1 : vector<8x128xf32>, i32 -> vector<8x128xf32>
    %17 = vector.broadcast %5 : vector<1x128xf32> to vector<8x128xf32>
    %18 = arith.mulf %16, %17 : vector<8x128xf32>
    %c2_14 = arith.constant 2 : index
    %c0_15 = arith.constant 0 : index
    %c0_16 = arith.constant 0 : index
    %19 = vector.load %arg1[%c2_14, %c0_15, %c0_16] : memref<15x8x8xf32, #tpu.memory_space<vmem>>, vector<1x8x8xf32>
    %20 = vector.shape_cast %19 : vector<1x8x8xf32> to vector<8x8xf32>
    %cst_17 = arith.constant dense<0.000000e+00> : vector<8x128xf32>
    %21 = tpu.matmul %20, %18, %cst_17 {dimension_numbers = #tpu.dot_dimension_numbers<[1], [0], [0], [1], [0, 0, 1, 1], [], []>} : vector<8x8xf32>, vector<8x128xf32>, vector<8x128xf32> -> vector<8x128xf32>
    %22 = arith.addf %15, %21 : vector<8x128xf32>
    %cst_18 = arith.constant dense<0.000000e+00> : vector<8x1xf32>
    %23 = tpu.matmul %22, %1, %cst_18 {dimension_numbers = #tpu.dot_dimension_numbers<[1], [0], [0], [1], [0, 0, 1, 1], [], []>} : vector<8x128xf32>, vector<128x1xf32>, vector<8x1xf32> -> vector<8x1xf32>
    %24 = arith.mulf %22, %22 : vector<8x128xf32>
    %cst_19 = arith.constant dense<0.000000e+00> : vector<8x1xf32>
    %25 = tpu.matmul %24, %1, %cst_19 {dimension_numbers = #tpu.dot_dimension_numbers<[1], [0], [0], [1], [0, 0, 1, 1], [], []>} : vector<8x128xf32>, vector<128x1xf32>, vector<8x1xf32> -> vector<8x1xf32>
    %cst_20 = arith.constant 3.125000e-02 : f32
    %26 = vector.broadcast %cst_20 : f32 to vector<8x1xf32>
    %27 = arith.mulf %23, %26 : vector<8x1xf32>
    %cst_21 = arith.constant 3.125000e-02 : f32
    %28 = vector.broadcast %cst_21 : f32 to vector<8x1xf32>
    %29 = arith.mulf %25, %28 : vector<8x1xf32>
    %30 = arith.mulf %27, %27 : vector<8x1xf32>
    %31 = arith.subf %29, %30 : vector<8x1xf32>
    %cst_22 = arith.constant 0.000000e+00 : f32
    %32 = vector.broadcast %cst_22 : f32 to vector<8x1xf32>
    %33 = arith.maximumf %31, %32 : vector<8x1xf32>
    %c0_23 = arith.constant 0 : index
    %c0_24 = arith.constant 0 : index
    %c0_25 = arith.constant 0 : index
    %34 = vector.load %arg2[%c0_23, %c0_24, %c0_25] : memref<5x8x1xf32, #tpu.memory_space<vmem>>, vector<1x8x1xf32>
    %35 = vector.shape_cast %34 : vector<1x8x1xf32> to vector<8x1xf32>
    %cst_26 = arith.constant 9.99999974E-6 : f32
    %36 = vector.broadcast %cst_26 : f32 to vector<8x1xf32>
    %37 = arith.addf %33, %36 : vector<8x1xf32>
    %38 = math.rsqrt %37 : vector<8x1xf32>
    %39 = arith.mulf %35, %38 : vector<8x1xf32>
    %c0_27 = arith.constant 0 : index
    %c0_28 = arith.constant 0 : index
    %c0_29 = arith.constant 0 : index
    %40 = vector.load %arg3[%c0_27, %c0_28, %c0_29] : memref<5x8x1xf32, #tpu.memory_space<vmem>>, vector<1x8x1xf32>
    %41 = vector.shape_cast %40 : vector<1x8x1xf32> to vector<8x1xf32>
    %42 = arith.mulf %27, %39 : vector<8x1xf32>
    %43 = arith.subf %41, %42 : vector<8x1xf32>
    %44 = vector.broadcast %39 : vector<8x1xf32> to vector<8x128xf32>
    %45 = arith.mulf %22, %44 : vector<8x128xf32>
    %46 = vector.broadcast %43 : vector<8x1xf32> to vector<8x128xf32>
    %47 = arith.addf %45, %46 : vector<8x128xf32>
    %cst_30 = arith.constant 0.000000e+00 : f32
    %48 = vector.broadcast %cst_30 : f32 to vector<8x128xf32>
    %49 = arith.maximumf %47, %48 : vector<8x128xf32>
    %c1_i32_31 = arith.constant 1 : i32
    %50 = tpu.dynamic_rotate %49 by %c1_i32_31 dim 1 : vector<8x128xf32>, i32 -> vector<8x128xf32>
    %51 = vector.broadcast %3 : vector<1x128xf32> to vector<8x128xf32>
    %52 = arith.mulf %50, %51 : vector<8x128xf32>
    %c3 = arith.constant 3 : index
    %c0_32 = arith.constant 0 : index
    %c0_33 = arith.constant 0 : index
    %53 = vector.load %arg1[%c3, %c0_32, %c0_33] : memref<15x8x8xf32, #tpu.memory_space<vmem>>, vector<1x8x8xf32>
    %54 = vector.shape_cast %53 : vector<1x8x8xf32> to vector<8x8xf32>
    %cst_34 = arith.constant dense<0.000000e+00> : vector<8x128xf32>
    %55 = tpu.matmul %54, %52, %cst_34 {dimension_numbers = #tpu.dot_dimension_numbers<[1], [0], [0], [1], [0, 0, 1, 1], [], []>} : vector<8x8xf32>, vector<8x128xf32>, vector<8x128xf32> -> vector<8x128xf32>
    %c4 = arith.constant 4 : index
    %c0_35 = arith.constant 0 : index
    %c0_36 = arith.constant 0 : index
    %56 = vector.load %arg1[%c4, %c0_35, %c0_36] : memref<15x8x8xf32, #tpu.memory_space<vmem>>, vector<1x8x8xf32>
    %57 = vector.shape_cast %56 : vector<1x8x8xf32> to vector<8x8xf32>
    %cst_37 = arith.constant dense<0.000000e+00> : vector<8x128xf32>
    %58 = tpu.matmul %57, %49, %cst_37 {dimension_numbers = #tpu.dot_dimension_numbers<[1], [0], [0], [1], [0, 0, 1, 1], [], []>} : vector<8x8xf32>, vector<8x128xf32>, vector<8x128xf32> -> vector<8x128xf32>
    %59 = arith.addf %55, %58 : vector<8x128xf32>
    %c127_i32_38 = arith.constant 127 : i32
    %60 = tpu.dynamic_rotate %49 by %c127_i32_38 dim 1 : vector<8x128xf32>, i32 -> vector<8x128xf32>
    %61 = vector.broadcast %5 : vector<1x128xf32> to vector<8x128xf32>
    %62 = arith.mulf %60, %61 : vector<8x128xf32>
    %c5 = arith.constant 5 : index
    %c0_39 = arith.constant 0 : index
    %c0_40 = arith.constant 0 : index
    %63 = vector.load %arg1[%c5, %c0_39, %c0_40] : memref<15x8x8xf32, #tpu.memory_space<vmem>>, vector<1x8x8xf32>
    %64 = vector.shape_cast %63 : vector<1x8x8xf32> to vector<8x8xf32>
    %cst_41 = arith.constant dense<0.000000e+00> : vector<8x128xf32>
    %65 = tpu.matmul %64, %62, %cst_41 {dimension_numbers = #tpu.dot_dimension_numbers<[1], [0], [0], [1], [0, 0, 1, 1], [], []>} : vector<8x8xf32>, vector<8x128xf32>, vector<8x128xf32> -> vector<8x128xf32>
    %66 = arith.addf %59, %65 : vector<8x128xf32>
    %cst_42 = arith.constant dense<0.000000e+00> : vector<8x1xf32>
    %67 = tpu.matmul %66, %1, %cst_42 {dimension_numbers = #tpu.dot_dimension_numbers<[1], [0], [0], [1], [0, 0, 1, 1], [], []>} : vector<8x128xf32>, vector<128x1xf32>, vector<8x1xf32> -> vector<8x1xf32>
    %68 = arith.mulf %66, %66 : vector<8x128xf32>
    %cst_43 = arith.constant dense<0.000000e+00> : vector<8x1xf32>
    %69 = tpu.matmul %68, %1, %cst_43 {dimension_numbers = #tpu.dot_dimension_numbers<[1], [0], [0], [1], [0, 0, 1, 1], [], []>} : vector<8x128xf32>, vector<128x1xf32>, vector<8x1xf32> -> vector<8x1xf32>
    %cst_44 = arith.constant 3.125000e-02 : f32
    %70 = vector.broadcast %cst_44 : f32 to vector<8x1xf32>
    %71 = arith.mulf %67, %70 : vector<8x1xf32>
    %cst_45 = arith.constant 3.125000e-02 : f32
    %72 = vector.broadcast %cst_45 : f32 to vector<8x1xf32>
    %73 = arith.mulf %69, %72 : vector<8x1xf32>
    %74 = arith.mulf %71, %71 : vector<8x1xf32>
    %75 = arith.subf %73, %74 : vector<8x1xf32>
    %cst_46 = arith.constant 0.000000e+00 : f32
    %76 = vector.broadcast %cst_46 : f32 to vector<8x1xf32>
    %77 = arith.maximumf %75, %76 : vector<8x1xf32>
    %c1_47 = arith.constant 1 : index
    %c0_48 = arith.constant 0 : index
    %c0_49 = arith.constant 0 : index
    %78 = vector.load %arg2[%c1_47, %c0_48, %c0_49] : memref<5x8x1xf32, #tpu.memory_space<vmem>>, vector<1x8x1xf32>
    %79 = vector.shape_cast %78 : vector<1x8x1xf32> to vector<8x1xf32>
    %cst_50 = arith.constant 9.99999974E-6 : f32
    %80 = vector.broadcast %cst_50 : f32 to vector<8x1xf32>
    %81 = arith.addf %77, %80 : vector<8x1xf32>
    %82 = math.rsqrt %81 : vector<8x1xf32>
    %83 = arith.mulf %79, %82 : vector<8x1xf32>
    %c1_51 = arith.constant 1 : index
    %c0_52 = arith.constant 0 : index
    %c0_53 = arith.constant 0 : index
    %84 = vector.load %arg3[%c1_51, %c0_52, %c0_53] : memref<5x8x1xf32, #tpu.memory_space<vmem>>, vector<1x8x1xf32>
    %85 = vector.shape_cast %84 : vector<1x8x1xf32> to vector<8x1xf32>
    %86 = arith.mulf %71, %83 : vector<8x1xf32>
    %87 = arith.subf %85, %86 : vector<8x1xf32>
    %88 = vector.broadcast %83 : vector<8x1xf32> to vector<8x128xf32>
    %89 = arith.mulf %66, %88 : vector<8x128xf32>
    %90 = vector.broadcast %87 : vector<8x1xf32> to vector<8x128xf32>
    %91 = arith.addf %89, %90 : vector<8x128xf32>
    %cst_54 = arith.constant 0.000000e+00 : f32
    %92 = vector.broadcast %cst_54 : f32 to vector<8x128xf32>
    %93 = arith.maximumf %91, %92 : vector<8x128xf32>
    %c1_i32_55 = arith.constant 1 : i32
    %94 = tpu.dynamic_rotate %93 by %c1_i32_55 dim 1 : vector<8x128xf32>, i32 -> vector<8x128xf32>
    %95 = vector.broadcast %3 : vector<1x128xf32> to vector<8x128xf32>
    %96 = arith.mulf %94, %95 : vector<8x128xf32>
    %c6 = arith.constant 6 : index
    %c0_56 = arith.constant 0 : index
    %c0_57 = arith.constant 0 : index
    %97 = vector.load %arg1[%c6, %c0_56, %c0_57] : memref<15x8x8xf32, #tpu.memory_space<vmem>>, vector<1x8x8xf32>
    %98 = vector.shape_cast %97 : vector<1x8x8xf32> to vector<8x8xf32>
    %cst_58 = arith.constant dense<0.000000e+00> : vector<8x128xf32>
    %99 = tpu.matmul %98, %96, %cst_58 {dimension_numbers = #tpu.dot_dimension_numbers<[1], [0], [0], [1], [0, 0, 1, 1], [], []>} : vector<8x8xf32>, vector<8x128xf32>, vector<8x128xf32> -> vector<8x128xf32>
    %c7 = arith.constant 7 : index
    %c0_59 = arith.constant 0 : index
    %c0_60 = arith.constant 0 : index
    %100 = vector.load %arg1[%c7, %c0_59, %c0_60] : memref<15x8x8xf32, #tpu.memory_space<vmem>>, vector<1x8x8xf32>
    %101 = vector.shape_cast %100 : vector<1x8x8xf32> to vector<8x8xf32>
    %cst_61 = arith.constant dense<0.000000e+00> : vector<8x128xf32>
    %102 = tpu.matmul %101, %93, %cst_61 {dimension_numbers = #tpu.dot_dimension_numbers<[1], [0], [0], [1], [0, 0, 1, 1], [], []>} : vector<8x8xf32>, vector<8x128xf32>, vector<8x128xf32> -> vector<8x128xf32>
    %103 = arith.addf %99, %102 : vector<8x128xf32>
    %c127_i32_62 = arith.constant 127 : i32
    %104 = tpu.dynamic_rotate %93 by %c127_i32_62 dim 1 : vector<8x128xf32>, i32 -> vector<8x128xf32>
    %105 = vector.broadcast %5 : vector<1x128xf32> to vector<8x128xf32>
    %106 = arith.mulf %104, %105 : vector<8x128xf32>
    %c8 = arith.constant 8 : index
    %c0_63 = arith.constant 0 : index
    %c0_64 = arith.constant 0 : index
    %107 = vector.load %arg1[%c8, %c0_63, %c0_64] : memref<15x8x8xf32, #tpu.memory_space<vmem>>, vector<1x8x8xf32>
    %108 = vector.shape_cast %107 : vector<1x8x8xf32> to vector<8x8xf32>
    %cst_65 = arith.constant dense<0.000000e+00> : vector<8x128xf32>
    %109 = tpu.matmul %108, %106, %cst_65 {dimension_numbers = #tpu.dot_dimension_numbers<[1], [0], [0], [1], [0, 0, 1, 1], [], []>} : vector<8x8xf32>, vector<8x128xf32>, vector<8x128xf32> -> vector<8x128xf32>
    %110 = arith.addf %103, %109 : vector<8x128xf32>
    %cst_66 = arith.constant dense<0.000000e+00> : vector<8x1xf32>
    %111 = tpu.matmul %110, %1, %cst_66 {dimension_numbers = #tpu.dot_dimension_numbers<[1], [0], [0], [1], [0, 0, 1, 1], [], []>} : vector<8x128xf32>, vector<128x1xf32>, vector<8x1xf32> -> vector<8x1xf32>
    %112 = arith.mulf %110, %110 : vector<8x128xf32>
    %cst_67 = arith.constant dense<0.000000e+00> : vector<8x1xf32>
    %113 = tpu.matmul %112, %1, %cst_67 {dimension_numbers = #tpu.dot_dimension_numbers<[1], [0], [0], [1], [0, 0, 1, 1], [], []>} : vector<8x128xf32>, vector<128x1xf32>, vector<8x1xf32> -> vector<8x1xf32>
    %cst_68 = arith.constant 3.125000e-02 : f32
    %114 = vector.broadcast %cst_68 : f32 to vector<8x1xf32>
    %115 = arith.mulf %111, %114 : vector<8x1xf32>
    %cst_69 = arith.constant 3.125000e-02 : f32
    %116 = vector.broadcast %cst_69 : f32 to vector<8x1xf32>
    %117 = arith.mulf %113, %116 : vector<8x1xf32>
    %118 = arith.mulf %115, %115 : vector<8x1xf32>
    %119 = arith.subf %117, %118 : vector<8x1xf32>
    %cst_70 = arith.constant 0.000000e+00 : f32
    %120 = vector.broadcast %cst_70 : f32 to vector<8x1xf32>
    %121 = arith.maximumf %119, %120 : vector<8x1xf32>
    %c2_71 = arith.constant 2 : index
    %c0_72 = arith.constant 0 : index
    %c0_73 = arith.constant 0 : index
    %122 = vector.load %arg2[%c2_71, %c0_72, %c0_73] : memref<5x8x1xf32, #tpu.memory_space<vmem>>, vector<1x8x1xf32>
    %123 = vector.shape_cast %122 : vector<1x8x1xf32> to vector<8x1xf32>
    %cst_74 = arith.constant 9.99999974E-6 : f32
    %124 = vector.broadcast %cst_74 : f32 to vector<8x1xf32>
    %125 = arith.addf %121, %124 : vector<8x1xf32>
    %126 = math.rsqrt %125 : vector<8x1xf32>
    %127 = arith.mulf %123, %126 : vector<8x1xf32>
    %c2_75 = arith.constant 2 : index
    %c0_76 = arith.constant 0 : index
    %c0_77 = arith.constant 0 : index
    %128 = vector.load %arg3[%c2_75, %c0_76, %c0_77] : memref<5x8x1xf32, #tpu.memory_space<vmem>>, vector<1x8x1xf32>
    %129 = vector.shape_cast %128 : vector<1x8x1xf32> to vector<8x1xf32>
    %130 = arith.mulf %115, %127 : vector<8x1xf32>
    %131 = arith.subf %129, %130 : vector<8x1xf32>
    %132 = vector.broadcast %127 : vector<8x1xf32> to vector<8x128xf32>
    %133 = arith.mulf %110, %132 : vector<8x128xf32>
    %134 = vector.broadcast %131 : vector<8x1xf32> to vector<8x128xf32>
    %135 = arith.addf %133, %134 : vector<8x128xf32>
    %cst_78 = arith.constant 0.000000e+00 : f32
    %136 = vector.broadcast %cst_78 : f32 to vector<8x128xf32>
    %137 = arith.maximumf %135, %136 : vector<8x128xf32>
    %c1_i32_79 = arith.constant 1 : i32
    %138 = tpu.dynamic_rotate %137 by %c1_i32_79 dim 1 : vector<8x128xf32>, i32 -> vector<8x128xf32>
    %139 = vector.broadcast %3 : vector<1x128xf32> to vector<8x128xf32>
    %140 = arith.mulf %138, %139 : vector<8x128xf32>
    %c9 = arith.constant 9 : index
    %c0_80 = arith.constant 0 : index
    %c0_81 = arith.constant 0 : index
    %141 = vector.load %arg1[%c9, %c0_80, %c0_81] : memref<15x8x8xf32, #tpu.memory_space<vmem>>, vector<1x8x8xf32>
    %142 = vector.shape_cast %141 : vector<1x8x8xf32> to vector<8x8xf32>
    %cst_82 = arith.constant dense<0.000000e+00> : vector<8x128xf32>
    %143 = tpu.matmul %142, %140, %cst_82 {dimension_numbers = #tpu.dot_dimension_numbers<[1], [0], [0], [1], [0, 0, 1, 1], [], []>} : vector<8x8xf32>, vector<8x128xf32>, vector<8x128xf32> -> vector<8x128xf32>
    %c10 = arith.constant 10 : index
    %c0_83 = arith.constant 0 : index
    %c0_84 = arith.constant 0 : index
    %144 = vector.load %arg1[%c10, %c0_83, %c0_84] : memref<15x8x8xf32, #tpu.memory_space<vmem>>, vector<1x8x8xf32>
    %145 = vector.shape_cast %144 : vector<1x8x8xf32> to vector<8x8xf32>
    %cst_85 = arith.constant dense<0.000000e+00> : vector<8x128xf32>
    %146 = tpu.matmul %145, %137, %cst_85 {dimension_numbers = #tpu.dot_dimension_numbers<[1], [0], [0], [1], [0, 0, 1, 1], [], []>} : vector<8x8xf32>, vector<8x128xf32>, vector<8x128xf32> -> vector<8x128xf32>
    %147 = arith.addf %143, %146 : vector<8x128xf32>
    %c127_i32_86 = arith.constant 127 : i32
    %148 = tpu.dynamic_rotate %137 by %c127_i32_86 dim 1 : vector<8x128xf32>, i32 -> vector<8x128xf32>
    %149 = vector.broadcast %5 : vector<1x128xf32> to vector<8x128xf32>
    %150 = arith.mulf %148, %149 : vector<8x128xf32>
    %c11 = arith.constant 11 : index
    %c0_87 = arith.constant 0 : index
    %c0_88 = arith.constant 0 : index
    %151 = vector.load %arg1[%c11, %c0_87, %c0_88] : memref<15x8x8xf32, #tpu.memory_space<vmem>>, vector<1x8x8xf32>
    %152 = vector.shape_cast %151 : vector<1x8x8xf32> to vector<8x8xf32>
    %cst_89 = arith.constant dense<0.000000e+00> : vector<8x128xf32>
    %153 = tpu.matmul %152, %150, %cst_89 {dimension_numbers = #tpu.dot_dimension_numbers<[1], [0], [0], [1], [0, 0, 1, 1], [], []>} : vector<8x8xf32>, vector<8x128xf32>, vector<8x128xf32> -> vector<8x128xf32>
    %154 = arith.addf %147, %153 : vector<8x128xf32>
    %cst_90 = arith.constant dense<0.000000e+00> : vector<8x1xf32>
    %155 = tpu.matmul %154, %1, %cst_90 {dimension_numbers = #tpu.dot_dimension_numbers<[1], [0], [0], [1], [0, 0, 1, 1], [], []>} : vector<8x128xf32>, vector<128x1xf32>, vector<8x1xf32> -> vector<8x1xf32>
    %156 = arith.mulf %154, %154 : vector<8x128xf32>
    %cst_91 = arith.constant dense<0.000000e+00> : vector<8x1xf32>
    %157 = tpu.matmul %156, %1, %cst_91 {dimension_numbers = #tpu.dot_dimension_numbers<[1], [0], [0], [1], [0, 0, 1, 1], [], []>} : vector<8x128xf32>, vector<128x1xf32>, vector<8x1xf32> -> vector<8x1xf32>
    %cst_92 = arith.constant 3.125000e-02 : f32
    %158 = vector.broadcast %cst_92 : f32 to vector<8x1xf32>
    %159 = arith.mulf %155, %158 : vector<8x1xf32>
    %cst_93 = arith.constant 3.125000e-02 : f32
    %160 = vector.broadcast %cst_93 : f32 to vector<8x1xf32>
    %161 = arith.mulf %157, %160 : vector<8x1xf32>
    %162 = arith.mulf %159, %159 : vector<8x1xf32>
    %163 = arith.subf %161, %162 : vector<8x1xf32>
    %cst_94 = arith.constant 0.000000e+00 : f32
    %164 = vector.broadcast %cst_94 : f32 to vector<8x1xf32>
    %165 = arith.maximumf %163, %164 : vector<8x1xf32>
    %c3_95 = arith.constant 3 : index
    %c0_96 = arith.constant 0 : index
    %c0_97 = arith.constant 0 : index
    %166 = vector.load %arg2[%c3_95, %c0_96, %c0_97] : memref<5x8x1xf32, #tpu.memory_space<vmem>>, vector<1x8x1xf32>
    %167 = vector.shape_cast %166 : vector<1x8x1xf32> to vector<8x1xf32>
    %cst_98 = arith.constant 9.99999974E-6 : f32
    %168 = vector.broadcast %cst_98 : f32 to vector<8x1xf32>
    %169 = arith.addf %165, %168 : vector<8x1xf32>
    %170 = math.rsqrt %169 : vector<8x1xf32>
    %171 = arith.mulf %167, %170 : vector<8x1xf32>
    %c3_99 = arith.constant 3 : index
    %c0_100 = arith.constant 0 : index
    %c0_101 = arith.constant 0 : index
    %172 = vector.load %arg3[%c3_99, %c0_100, %c0_101] : memref<5x8x1xf32, #tpu.memory_space<vmem>>, vector<1x8x1xf32>
    %173 = vector.shape_cast %172 : vector<1x8x1xf32> to vector<8x1xf32>
    %174 = arith.mulf %159, %171 : vector<8x1xf32>
    %175 = arith.subf %173, %174 : vector<8x1xf32>
    %176 = vector.broadcast %171 : vector<8x1xf32> to vector<8x128xf32>
    %177 = arith.mulf %154, %176 : vector<8x128xf32>
    %178 = vector.broadcast %175 : vector<8x1xf32> to vector<8x128xf32>
    %179 = arith.addf %177, %178 : vector<8x128xf32>
    %cst_102 = arith.constant 0.000000e+00 : f32
    %180 = vector.broadcast %cst_102 : f32 to vector<8x128xf32>
    %181 = arith.maximumf %179, %180 : vector<8x128xf32>
    %c1_i32_103 = arith.constant 1 : i32
    %182 = tpu.dynamic_rotate %181 by %c1_i32_103 dim 1 : vector<8x128xf32>, i32 -> vector<8x128xf32>
    %183 = vector.broadcast %3 : vector<1x128xf32> to vector<8x128xf32>
    %184 = arith.mulf %182, %183 : vector<8x128xf32>
    %c12 = arith.constant 12 : index
    %c0_104 = arith.constant 0 : index
    %c0_105 = arith.constant 0 : index
    %185 = vector.load %arg1[%c12, %c0_104, %c0_105] : memref<15x8x8xf32, #tpu.memory_space<vmem>>, vector<1x8x8xf32>
    %186 = vector.shape_cast %185 : vector<1x8x8xf32> to vector<8x8xf32>
    %cst_106 = arith.constant dense<0.000000e+00> : vector<8x128xf32>
    %187 = tpu.matmul %186, %184, %cst_106 {dimension_numbers = #tpu.dot_dimension_numbers<[1], [0], [0], [1], [0, 0, 1, 1], [], []>} : vector<8x8xf32>, vector<8x128xf32>, vector<8x128xf32> -> vector<8x128xf32>
    %c13 = arith.constant 13 : index
    %c0_107 = arith.constant 0 : index
    %c0_108 = arith.constant 0 : index
    %188 = vector.load %arg1[%c13, %c0_107, %c0_108] : memref<15x8x8xf32, #tpu.memory_space<vmem>>, vector<1x8x8xf32>
    %189 = vector.shape_cast %188 : vector<1x8x8xf32> to vector<8x8xf32>
    %cst_109 = arith.constant dense<0.000000e+00> : vector<8x128xf32>
    %190 = tpu.matmul %189, %181, %cst_109 {dimension_numbers = #tpu.dot_dimension_numbers<[1], [0], [0], [1], [0, 0, 1, 1], [], []>} : vector<8x8xf32>, vector<8x128xf32>, vector<8x128xf32> -> vector<8x128xf32>
    %191 = arith.addf %187, %190 : vector<8x128xf32>
    %c127_i32_110 = arith.constant 127 : i32
    %192 = tpu.dynamic_rotate %181 by %c127_i32_110 dim 1 : vector<8x128xf32>, i32 -> vector<8x128xf32>
    %193 = vector.broadcast %5 : vector<1x128xf32> to vector<8x128xf32>
    %194 = arith.mulf %192, %193 : vector<8x128xf32>
    %c14 = arith.constant 14 : index
    %c0_111 = arith.constant 0 : index
    %c0_112 = arith.constant 0 : index
    %195 = vector.load %arg1[%c14, %c0_111, %c0_112] : memref<15x8x8xf32, #tpu.memory_space<vmem>>, vector<1x8x8xf32>
    %196 = vector.shape_cast %195 : vector<1x8x8xf32> to vector<8x8xf32>
    %cst_113 = arith.constant dense<0.000000e+00> : vector<8x128xf32>
    %197 = tpu.matmul %196, %194, %cst_113 {dimension_numbers = #tpu.dot_dimension_numbers<[1], [0], [0], [1], [0, 0, 1, 1], [], []>} : vector<8x8xf32>, vector<8x128xf32>, vector<8x128xf32> -> vector<8x128xf32>
    %198 = arith.addf %191, %197 : vector<8x128xf32>
    %cst_114 = arith.constant dense<0.000000e+00> : vector<8x1xf32>
    %199 = tpu.matmul %198, %1, %cst_114 {dimension_numbers = #tpu.dot_dimension_numbers<[1], [0], [0], [1], [0, 0, 1, 1], [], []>} : vector<8x128xf32>, vector<128x1xf32>, vector<8x1xf32> -> vector<8x1xf32>
    %200 = arith.mulf %198, %198 : vector<8x128xf32>
    %cst_115 = arith.constant dense<0.000000e+00> : vector<8x1xf32>
    %201 = tpu.matmul %200, %1, %cst_115 {dimension_numbers = #tpu.dot_dimension_numbers<[1], [0], [0], [1], [0, 0, 1, 1], [], []>} : vector<8x128xf32>, vector<128x1xf32>, vector<8x1xf32> -> vector<8x1xf32>
    %cst_116 = arith.constant 3.125000e-02 : f32
    %202 = vector.broadcast %cst_116 : f32 to vector<8x1xf32>
    %203 = arith.mulf %199, %202 : vector<8x1xf32>
    %cst_117 = arith.constant 3.125000e-02 : f32
    %204 = vector.broadcast %cst_117 : f32 to vector<8x1xf32>
    %205 = arith.mulf %201, %204 : vector<8x1xf32>
    %206 = arith.mulf %203, %203 : vector<8x1xf32>
    %207 = arith.subf %205, %206 : vector<8x1xf32>
    %cst_118 = arith.constant 0.000000e+00 : f32
    %208 = vector.broadcast %cst_118 : f32 to vector<8x1xf32>
    %209 = arith.maximumf %207, %208 : vector<8x1xf32>
    %c4_119 = arith.constant 4 : index
    %c0_120 = arith.constant 0 : index
    %c0_121 = arith.constant 0 : index
    %210 = vector.load %arg2[%c4_119, %c0_120, %c0_121] : memref<5x8x1xf32, #tpu.memory_space<vmem>>, vector<1x8x1xf32>
    %211 = vector.shape_cast %210 : vector<1x8x1xf32> to vector<8x1xf32>
    %cst_122 = arith.constant 9.99999974E-6 : f32
    %212 = vector.broadcast %cst_122 : f32 to vector<8x1xf32>
    %213 = arith.addf %209, %212 : vector<8x1xf32>
    %214 = math.rsqrt %213 : vector<8x1xf32>
    %215 = arith.mulf %211, %214 : vector<8x1xf32>
    %c4_123 = arith.constant 4 : index
    %c0_124 = arith.constant 0 : index
    %c0_125 = arith.constant 0 : index
    %216 = vector.load %arg3[%c4_123, %c0_124, %c0_125] : memref<5x8x1xf32, #tpu.memory_space<vmem>>, vector<1x8x1xf32>
    %217 = vector.shape_cast %216 : vector<1x8x1xf32> to vector<8x1xf32>
    %218 = arith.mulf %203, %215 : vector<8x1xf32>
    %219 = arith.subf %217, %218 : vector<8x1xf32>
    %220 = vector.broadcast %215 : vector<8x1xf32> to vector<8x128xf32>
    %221 = arith.mulf %198, %220 : vector<8x128xf32>
    %222 = vector.broadcast %219 : vector<8x1xf32> to vector<8x128xf32>
    %223 = arith.addf %221, %222 : vector<8x128xf32>
    %cst_126 = arith.constant 0.000000e+00 : f32
    %224 = vector.broadcast %cst_126 : f32 to vector<8x128xf32>
    %225 = arith.maximumf %223, %224 : vector<8x128xf32>
    %226 = arith.addf %225, %0 : vector<8x128xf32>
    %c0_127 = arith.constant 0 : index
    %c0_128 = arith.constant 0 : index
    %227 = vector.load %arg6[%c0_127, %c0_128] : memref<8x128xf32, #tpu.memory_space<vmem>>, vector<8x128xf32>
    tpu.vector_store %arg6[%c0_127, %c0_128], %226 {strides = array<i32>} : memref<8x128xf32, #tpu.memory_space<vmem>>, vector<8x128xf32>,
    return
  }
}

</mosaic_0001>

<bundles_post_ra>
// kernel: tpu_custom_call.1
= control target key start
LH: loop header
LB: loop body
LE: loop exit
PB: predicated region body
PF: predicated region fallthrough
CT: control target
= control target key end

     0   :  { %s3037_s23 = smov 1   ;;  %v3038_v1 = vmov 0.0   ;;  %vm3039_vm0 = vmmov 0   ;;  %vm56_vm1 = vcmask 64512   ;;  %s3509_s0 = inlined_call_operand.vmem [shape: f32[8,128], index: 0, kind: input, shape index: {}]   ;;  %s3510_s1 = inlined_call_operand.vmem [shape: f32[15,8,8], index: 1, kind: input, shape index: {}]   ;;  %s3511_s2 = inlined_call_operand.vmem [shape: f32[5,8,1], index: 2, kind: input, shape index: {}]   ;;  %s3512_s3 = inlined_call_operand.vmem [shape: f32[5,8,1], index: 3, kind: input, shape index: {}]   ;;  %s3513_s4 = inlined_call_operand.vmem [shape: f32[128,1], index: 4, kind: input, shape index: {}]   ;;  %s3514_s5 = inlined_call_operand.vmem [shape: f32[3,1,128], index: 5, kind: input, shape index: {}]   ;;  %s3515_s6 = inlined_call_operand.hbm [shape: f32[8,128], index: 6, kind: output, shape index: {}]  }
   0x1   :  { %v3082_v0 = vld [vmem:[%s3509_s0] sm:$0xff]  ;;  %2315 = vmatprep.subr.mxu0 %v3038_v1  ;;  %v2072_v2 = vld [vmem:[%s3510_s1 + $0x8] sm:$0xff]  ;;  %2317 = vmatprep.mubr.msk.f32.mxu0 %vm3039_vm0, %v3038_v1  ;;  %v27_v6 = vld [vmem:[%s3513_s4 + $0x10] sm:$0xff] }
   0x2   :  { %44 = vrot.lane.b32.xlu0 %v3082_v0, %s3037_s23  ;;  %2310 = vmatprep.subr.mxu1 %v3038_v1  ;;  %v25_v3 = vld [vmem:[%s3513_s4] sm:$0xff]  ;;  %v26_v4 = vld [vmem:[%s3513_s4 + $0x8] sm:$0xff]  ;;  %v28_v7 = vld [vmem:[%s3513_s4 + $0x18] sm:$0xff] }
   0x3   :  { %2311 = vmatpush3.msra.mxu1 %v3082_v0  ;;  %2312 = vmatprep.mubr.msk.f32.mxu1 %vm3039_vm0, %v3038_v1  ;;  %v3102_v5 = vpack.c.bf16 %v26_v4, %v25_v3 }
   0x4   :  { %11 = vsyncpa [#allocation3], 0  ;;  %2313 = vmatmul.mubr.msk.f32.vlgmr.msra.gmra.mrb[0].mxu1 %vm56_vm1, %v2072_v2  ;;  %v3040_v8 = vmov 0.0|0.0   ;;  %s3041_s9 = smov 127   ;;  %v3115_v9 = vpack.c.bf16 %v28_v7, %v27_v6  ;;  %v29_v10 = vld [vmem:[%s3513_s4 + $0x20] sm:$0xff]  ;;  %v30_v11 = vld [vmem:[%s3513_s4 + $0x28] sm:$0xff] }
   0x5   :  { %2735 = vmatprep.subr.bf16.mxu1 %v3040_v8  ;;  %2357 = vmatprep.mubr.msk.f32.mxu1 %vm3039_vm0, %v3038_v1  ;;  %v3127_v12 = vpack.c.bf16 %v30_v11, %v29_v10  ;;  %v31_v13 = vld [vmem:[%s3513_s4 + $0x30] sm:$0xff]  ;;  %v32_v14 = vld [vmem:[%s3513_s4 + $0x38] sm:$0xff]  ;;  %v33_v16 = vld [vmem:[%s3513_s4 + $0x40] sm:$0xff]  ;;  %v3042_v42 = vmov 0   ;;  %s3043_s10 = smov [#allocation2]  }
   0x6   :  { %203 = vrot.lane.b32.xlu0 %v3082_v0, %s3041_s9  ;;  %2737 = vmatpush3.bf16.msra.mxu1 %v3102_v5  ;;  %v3137_v15 = vpack.c.bf16 %v32_v14, %v31_v13  ;;  %v34_v17 = vld [vmem:[%s3513_s4 + $0x48] sm:$0xff]  ;;  %v35_v19 = vld [vmem:[%s3513_s4 + $0x50] sm:$0xff]  ;;  %v36_v20 = vld [vmem:[%s3513_s4 + $0x58] sm:$0xff]  ;;  %s2062_s11 = sshll.u32 %s3043_s10, 4  ;;  %s2063_s11 = int_to_ptr.vmem [resolvable:$true] %s2062_s11 }
   0x7   :  { %2738 = vmatprep.subr.bf16.mxu1 %v3040_v8  ;;  %v3147_v18 = vpack.c.bf16 %v34_v17, %v33_v16  ;;  %v3157_v21 = vpack.c.bf16 %v36_v20, %v35_v19  ;;  %v37_v22 = vld [vmem:[%s3513_s4 + $0x60] sm:$0xff]  ;;  %v38_v23 = vld [vmem:[%s3513_s4 + $0x68] sm:$0xff]  ;;  %v2076_v32 = vld [vmem:[%s3510_s1 + $0x10] sm:$0xff]  ;;  %3001 = vset.pattern.permute.xlu1 %v3042_v42  ;;  %p3018_p1 = scmp.lt.s32.totalorder %s2063_s11, %s2063_s11 }
   0x8   :  { %v3167_v24 = vpack.c.bf16 %v38_v23, %v37_v22  ;;  %v3175_v25 = vld [vmem:[%s3514_s5] ss:$0 sm:$0xff]  ;;  %v3184_v29 = vld [vmem:[%s3514_s5 + $0x2] ss:$0 sm:$0xff]  ;;  %v39_v33 = vld [vmem:[%s3513_s4 + $0x70] sm:$0xff]  ;;  %3002 = vset.pattern.permute.xlu0 %v3042_v42 }
   0x9   :  { %v53_v28 = vld [vmem:[%s3510_s1] sm:$0xff]  ;;  %v40_v34 = vld [vmem:[%s3513_s4 + $0x78] sm:$0xff]  ;;  %v2082_v11 = vld [vmem:[%s3510_s1 + $0x28] sm:$0xff] }
   0xa   :  { %2740 = vmatpush3.bf16.msra.mxu1 %v3115_v9  ;;  %v3218_v35 = vpack.c.bf16 %v40_v34, %v39_v33  ;;  %v434_v53 = vld [vmem:[%s3511_s2] sm:$0xff]  ;;  %v2078_v7 = vld [vmem:[%s3510_s1 + $0x18] sm:$0xff] }
   0xb   :  { %2741 = vmatprep.subr.bf16.mxu1 %v3040_v8  ;;  %v438_v56 = vld [vmem:[%s3512_s3] sm:$0xff] }
   0xc   :  { %v2079_v2 = vld [vmem:[%s3510_s1 + $0x20] sm:$0xff] }
   0xe   :  { %2743 = vmatpush3.bf16.msra.mxu1 %v3127_v12 }
   0xf   :  { %2744 = vmatprep.subr.bf16.mxu1 %v3040_v8 }
  0x12   :  { %2746 = vmatpush3.bf16.msra.mxu1 %v3137_v15 }
  0x13   :  { %2747 = vmatprep.subr.bf16.mxu1 %v3040_v8 }
  0x16   :  { %2749 = vmatpush3.bf16.msra.mxu1 %v3147_v18 }
  0x17   :  { %2750 = vmatprep.subr.bf16.mxu1 %v3040_v8 }
  0x1a   :  { %2752 = vmatpush3.bf16.msra.mxu1 %v3157_v21 }
  0x1b   :  { %2753 = vmatprep.subr.bf16.mxu1 %v3040_v8 }
  0x1e   :  { %2755 = vmatpush3.bf16.msra.mxu1 %v3167_v24 }
  0x1f   :  { %2756 = vmatprep.subr.bf16.mxu1 %v3040_v8 }
  0x22   :  { %2758 = vmatpush3.bf16.msra.mxu1 %v3218_v35 }
  0x23   :  { %2395 = vmatprep.subr.mxu1 %v3038_v1 }
  0x74   :  { %v45_v26 = vpop.permute.xlu0 %44 }
  0x75   :  { %v52_v27 = vmul.f32 %v3175_v25, %v45_v26 }
  0x77   :  { %2316 = vmatpush3.msra.mxu0 %v52_v27 }
  0x78   :  { %2318 = vmatmul.mubr.msk.f32.vlgmr.msra.gmra.mrb[0].mxu0 %vm56_vm1, %v53_v28  ;;  %v204_v30 = vpop.permute.xlu0 %203  ;;  %2320 = vmatprep.subr.mxu0 %v3038_v1 }
  0x79   :  { %v211_v31 = vmul.f32 %v3184_v29, %v204_v30  ;;  %2322 = vmatprep.mubr.msk.f32.mxu0 %vm3039_vm0, %v3038_v1 }
  0x7b   :  { %2321 = vmatpush3.msra.mxu0 %v211_v31 }
  0x7c   :  { %2759 = vmatprep.subr.bf16.mxu0 %v3040_v8 }
  0x80   :  { %2323 = vmatmul.mubr.msk.f32.vlgmr.msra.gmra.mrb[0].mxu0 %vm56_vm1, %v2076_v32  ;;  %v2084_v32 = vld [vmem:[%s3511_s2 + $0x8] sm:$0xff] }
  0x81   :  { %2761 = vmatpush3.bf16.msra.mxu0 %v3102_v5  ;;  %2392 = vmatprep.mubr.msk.f32.mxu0 %vm3039_vm0, %v3038_v1 }
  0x82   :  { %2762 = vmatprep.subr.bf16.mxu0 %v3040_v8 }
  0x85   :  { %2764 = vmatpush3.bf16.msra.mxu0 %v3115_v9 }
  0x86   :  { %2765 = vmatprep.subr.bf16.mxu0 %v3040_v8 }
  0x89   :  { %2767 = vmatpush3.bf16.msra.mxu0 %v3127_v12 }
  0x8a   :  { %2768 = vmatprep.subr.bf16.mxu0 %v3040_v8 }
  0x8d   :  { %2770 = vmatpush3.bf16.msra.mxu0 %v3137_v15 }
  0x8e   :  { %2771 = vmatprep.subr.bf16.mxu0 %v3040_v8 }
  0x91   :  { %2773 = vmatpush3.bf16.msra.mxu0 %v3147_v18 }
  0x92   :  { %2774 = vmatprep.subr.bf16.mxu0 %v3040_v8 }
  0x95   :  { %2776 = vmatpush3.bf16.msra.mxu0 %v3157_v21 }
  0x96   :  { %2777 = vmatprep.subr.bf16.mxu0 %v3040_v8 }
  0x99   :  { %2779 = vmatpush3.bf16.msra.mxu0 %v3167_v24 }
  0x9a   :  { %2780 = vmatprep.subr.bf16.mxu0 %v3040_v8 }
  0x9d   :  { %2782 = vmatpush3.bf16.msra.mxu0 %v3218_v35 }
  0x9e   :  { %2783 = vmatprep.subr.bf16.mxu0 %v3040_v8 }
  0xd7   :  { %v126_v36 = vpop.f32.mrb[0].mxu1 }
  0xd8   :  { %v2314_v37 = vpop.f32.mrb[1].mxu1 }
 0x153   :  { %v283_v38 = vpop.f32.mrb[0].mxu0 }
 0x154   :  { %v2975_v39 = vadd.f32 %v283_v38, %v126_v36  ;;  %v2324_v40 = vpop.f32.mrb[1].mxu0  ;;  %v2085_v36 = vld [vmem:[%s3512_s3 + $0x8] sm:$0xff] }
 0x156   :  { %v358_v41 = vmul.f32 %v2975_v39, %v2975_v39  ;;  %2358 = vmatmul.mubr.f32.vlgmr.msra.gmra.mrb[2].mxu1 %v2975_v39 }
 0x157   :  { %2397 = vmatprep.mubr.msk.f32.mxu1 %vm3039_vm0, %v3038_v1 }
 0x158   :  { %2393 = vmatmul.mubr.f32.vlgmr.msra.gmra.mrb[2].mxu0 %v358_v41 }
 0x159   :  { %2785 = vmatpush3.bf16.msra.mxu0 %v3102_v5  ;;  %2442 = vmatprep.mubr.msk.f32.mxu0 %vm3039_vm0, %v3038_v1 }
 0x15a   :  { %2786 = vmatprep.subr.bf16.mxu0 %v3040_v8 }
 0x15d   :  { %2788 = vmatpush3.bf16.msra.mxu0 %v3115_v9 }
 0x15e   :  { %2789 = vmatprep.subr.bf16.mxu0 %v3040_v8 }
 0x161   :  { %2791 = vmatpush3.bf16.msra.mxu0 %v3127_v12 }
 0x162   :  { %2792 = vmatprep.subr.bf16.mxu0 %v3040_v8 }
 0x165   :  { %2794 = vmatpush3.bf16.msra.mxu0 %v3137_v15 }
 0x166   :  { %2795 = vmatprep.subr.bf16.mxu0 %v3040_v8 }
 0x169   :  { %2797 = vmatpush3.bf16.msra.mxu0 %v3147_v18 }
 0x16a   :  { %2798 = vmatprep.subr.bf16.mxu0 %v3040_v8 }
 0x16d   :  { %2800 = vmatpush3.bf16.msra.mxu0 %v3157_v21 }
 0x16e   :  { %2801 = vmatprep.subr.bf16.mxu0 %v3040_v8 }
 0x171   :  { %2803 = vmatpush3.bf16.msra.mxu0 %v3167_v24 }
 0x172   :  { %2804 = vmatprep.subr.bf16.mxu0 %v3040_v8 }
 0x175   :  { %2806 = vmatpush3.bf16.msra.mxu0 %v3218_v35 }
 0x176   :  { %2480 = vmatprep.subr.mxu0 %v3038_v1 }
 0x229   :  { %v354_v43 = vpop.f32.mrb[2].mxu1 }
 0x22a   :  { %v429_v44 = vmul.f32 0.03125, %v354_v43  ;;  %v2359_v45 = vpop.f32.mrb[3].mxu1 }
 0x22b   :  { %v425_v46 = vpop.f32.mrb[2].mxu0 }
 0x22c   :  { %v431_v47 = vmul.f32 %v429_v44, %v429_v44  ;;  %v430_v48 = vmul.f32 0.03125, %v425_v46  ;;  %v2394_v49 = vpop.f32.mrb[3].mxu0 }
 0x22e   :  { %v432_v50 = vsub.f32 %v430_v48, %v431_v47  ;;  %v2086_v48 = vld [vmem:[%s3510_s1 + $0x30] sm:$0xff] }
 0x230   :  { %v433_v51 = vmax.f32 %v432_v50, 0.0  ;;  %v2090_v50 = vld [vmem:[%s3510_s1 + $0x40] sm:$0xff] }
 0x232   :  { %v435_v52 = vadd.f32 1e-05, %v433_v51 }
 0x234   :  { %3003 = vrsqrt.f32 %v435_v52 }
 0x23e   :  { %v3004_v54 = vpop.eup %3003 }
 0x23f   :  { %v437_v55 = vmul.f32 %v3004_v54, %v434_v53 }
 0x241   :  { %443 = vperm.xlu1 %3001, %v437_v55   ;;  %v439_v57 = vmul.f32 %v437_v55, %v429_v44  ;;  %v2087_v44 = vld [vmem:[%s3510_s1 + $0x38] sm:$0xff] }
 0x243   :  { %v440_v58 = vsub.f32 %v438_v56, %v439_v57 }
 0x245   :  { %449 = vperm.xlu1 %3001, %v440_v58  }
 0x2c0   :  { %v444_v59 = vpop.permute.xlu1 %443 }
 0x2c1   :  { %v446_v60 = vmul.f32 %v2975_v39, %v444_v59 }
 0x2c4   :  { %v450_v61 = vpop.permute.xlu1 %449 }
 0x2c5   :  { %v452_v62 = vadd.f32 %v450_v61, %v446_v60 }
 0x2c7   :  { %v453_v63 = vmax.f32 %v452_v62, 0.0 }
 0x2c9   :  { %607 = vrot.lane.b32.xlu1 %v453_v63, %s3041_s9  ;;  %454 = vrot.lane.b32.xlu0 %v453_v63, %s3037_s23 }
 0x2ca   :  { %2396 = vmatpush3.msra.mxu1 %v453_v63 }
 0x2cb   :  { %2398 = vmatmul.mubr.msk.f32.vlgmr.msra.gmra.mrb[4].mxu1 %vm56_vm1, %v2079_v2  ;;  %2400 = vmatprep.subr.mxu1 %v3038_v1  ;;  %v2092_v2 = vld [vmem:[%s3511_s2 + $0x10] sm:$0xff] }
 0x2cc   :  { %2402 = vmatprep.mubr.msk.f32.mxu1 %vm3039_vm0, %v3038_v1 }
 0x33b   :  { %v608_v3 = vpop.permute.xlu1 %607  ;;  %v455_v4 = vpop.permute.xlu0 %454 }
 0x33c   :  { %v456_v6 = vmul.f32 %v3175_v25, %v455_v4  ;;  %v609_v10 = vmul.f32 %v3184_v29, %v608_v3 }
 0x33e   :  { %2401 = vmatpush3.msra.mxu1 %v456_v6  ;;  %v2093_v6 = vld [vmem:[%s3512_s3 + $0x10] sm:$0xff] }
 0x33f   :  { %2403 = vmatmul.mubr.msk.f32.vlgmr.msra.gmra.mrb[4].mxu1 %vm56_vm1, %v2078_v7  ;;  %2405 = vmatprep.subr.mxu1 %v3038_v1 }
 0x340   :  { %2406 = vmatpush3.msra.mxu1 %v609_v10  ;;  %2407 = vmatprep.mubr.msk.f32.mxu1 %vm3039_vm0, %v3038_v1 }
 0x341   :  { %2807 = vmatprep.subr.bf16.mxu1 %v3040_v8 }
 0x347   :  { %2408 = vmatmul.mubr.msk.f32.vlgmr.msra.gmra.mrb[4].mxu1 %vm56_vm1, %v2082_v11 }
 0x348   :  { %2809 = vmatpush3.bf16.msra.mxu1 %v3102_v5  ;;  %2477 = vmatprep.mubr.msk.f32.mxu1 %vm3039_vm0, %v3038_v1 }
 0x349   :  { %2810 = vmatprep.subr.bf16.mxu1 %v3040_v8 }
 0x34c   :  { %2812 = vmatpush3.bf16.msra.mxu1 %v3115_v9 }
 0x34d   :  { %2813 = vmatprep.subr.bf16.mxu1 %v3040_v8 }
 0x350   :  { %2815 = vmatpush3.bf16.msra.mxu1 %v3127_v12 }
 0x351   :  { %2816 = vmatprep.subr.bf16.mxu1 %v3040_v8 }
 0x354   :  { %2818 = vmatpush3.bf16.msra.mxu1 %v3137_v15 }
 0x355   :  { %2819 = vmatprep.subr.bf16.mxu1 %v3040_v8 }
 0x358   :  { %2821 = vmatpush3.bf16.msra.mxu1 %v3147_v18 }
 0x359   :  { %2822 = vmatprep.subr.bf16.mxu1 %v3040_v8 }
 0x35c   :  { %2824 = vmatpush3.bf16.msra.mxu1 %v3157_v21 }
 0x35d   :  { %2825 = vmatprep.subr.bf16.mxu1 %v3040_v8 }
 0x360   :  { %2827 = vmatpush3.bf16.msra.mxu1 %v3167_v24 }
 0x361   :  { %2828 = vmatprep.subr.bf16.mxu1 %v3040_v8 }
 0x364   :  { %2830 = vmatpush3.bf16.msra.mxu1 %v3218_v35 }
 0x365   :  { %2831 = vmatprep.subr.bf16.mxu1 %v3040_v8 }
 0x41a   :  { %v681_v13 = vpop.f32.mrb[4].mxu1 }
 0x41b   :  { %v756_v14 = vmul.f32 %v681_v13, %v681_v13  ;;  %v2409_v16 = vpop.f32.mrb[5].mxu1  ;;  %2443 = vmatmul.mubr.f32.vlgmr.msra.gmra.mrb[4].mxu0 %v681_v13 }
 0x41c   :  { %2482 = vmatprep.mubr.msk.f32.mxu0 %vm3039_vm0, %v3038_v1 }
 0x41d   :  { %2478 = vmatmul.mubr.f32.vlgmr.msra.gmra.mrb[6].mxu1 %v756_v14 }
 0x41e   :  { %2833 = vmatpush3.bf16.msra.mxu1 %v3102_v5  ;;  %2527 = vmatprep.mubr.msk.f32.mxu1 %vm3039_vm0, %v3038_v1 }
 0x41f   :  { %2834 = vmatprep.subr.bf16.mxu1 %v3040_v8 }
 0x422   :  { %2836 = vmatpush3.bf16.msra.mxu1 %v3115_v9 }
 0x423   :  { %2837 = vmatprep.subr.bf16.mxu1 %v3040_v8 }
 0x426   :  { %2839 = vmatpush3.bf16.msra.mxu1 %v3127_v12 }
 0x427   :  { %2840 = vmatprep.subr.bf16.mxu1 %v3040_v8 }
 0x42a   :  { %2842 = vmatpush3.bf16.msra.mxu1 %v3137_v15 }
 0x42b   :  { %2843 = vmatprep.subr.bf16.mxu1 %v3040_v8 }
 0x42e   :  { %2845 = vmatpush3.bf16.msra.mxu1 %v3147_v18 }
 0x42f   :  { %2846 = vmatprep.subr.bf16.mxu1 %v3040_v8 }
 0x432   :  { %2848 = vmatpush3.bf16.msra.mxu1 %v3157_v21 }
 0x433   :  { %2849 = vmatprep.subr.bf16.mxu1 %v3040_v8 }
 0x436   :  { %2851 = vmatpush3.bf16.msra.mxu1 %v3167_v24 }
 0x437   :  { %2852 = vmatprep.subr.bf16.mxu1 %v3040_v8 }
 0x43a   :  { %2854 = vmatpush3.bf16.msra.mxu1 %v3218_v35 }
 0x43b   :  { %2565 = vmatprep.subr.mxu1 %v3038_v1 }
 0x4ee   :  { %v752_v17 = vpop.f32.mrb[4].mxu0 }
 0x4ef   :  { %v827_v19 = vmul.f32 0.03125, %v752_v17  ;;  %v2444_v20 = vpop.f32.mrb[5].mxu0 }
 0x4f0   :  { %v823_v22 = vpop.f32.mrb[6].mxu1 }
 0x4f1   :  { %v829_v23 = vmul.f32 %v827_v19, %v827_v19  ;;  %v828_v26 = vmul.f32 0.03125, %v823_v22  ;;  %v2479_v27 = vpop.f32.mrb[7].mxu1 }
 0x4f3   :  { %v830_v28 = vsub.f32 %v828_v26, %v829_v23  ;;  %v2094_v26 = vld [vmem:[%s3510_s1 + $0x48] sm:$0xff] }
 0x4f5   :  { %v831_v30 = vmax.f32 %v830_v28, 0.0  ;;  %v2098_v28 = vld [vmem:[%s3510_s1 + $0x58] sm:$0xff] }
 0x4f7   :  { %v834_v31 = vadd.f32 1e-05, %v831_v30 }
 0x4f9   :  { %3005 = vrsqrt.f32 %v834_v31 }
 0x503   :  { %v3006_v33 = vpop.eup %3005 }
 0x504   :  { %v836_v34 = vmul.f32 %v3006_v33, %v2084_v32 }
 0x506   :  { %843 = vperm.xlu0 %3002, %v836_v34   ;;  %v839_v37 = vmul.f32 %v836_v34, %v827_v19  ;;  %v2095_v19 = vld [vmem:[%s3510_s1 + $0x50] sm:$0xff] }
 0x508   :  { %v840_v38 = vsub.f32 %v2085_v36, %v839_v37 }
 0x50a   :  { %849 = vperm.xlu1 %3001, %v840_v38  }
 0x585   :  { %v844_v39 = vpop.permute.xlu0 %843 }
 0x586   :  { %v846_v40 = vmul.f32 %v844_v39, %v681_v13 }
 0x589   :  { %v850_v41 = vpop.permute.xlu1 %849 }
 0x58a   :  { %v852_v42 = vadd.f32 %v850_v41, %v846_v40 }
 0x58c   :  { %v853_v43 = vmax.f32 %v852_v42, 0.0 }
 0x58e   :  { %1007 = vrot.lane.b32.xlu0 %v853_v43, %s3041_s9  ;;  %854 = vrot.lane.b32.xlu1 %v853_v43, %s3037_s23 }
 0x58f   :  { %2481 = vmatpush3.msra.mxu0 %v853_v43 }
 0x590   :  { %2483 = vmatmul.mubr.msk.f32.vlgmr.msra.gmra.mrb[6].mxu0 %vm56_vm1, %v2087_v44  ;;  %2485 = vmatprep.subr.mxu0 %v3038_v1  ;;  %v2100_v44 = vld [vmem:[%s3511_s2 + $0x18] sm:$0xff] }
 0x591   :  { %2487 = vmatprep.mubr.msk.f32.mxu0 %vm3039_vm0, %v3038_v1 }
 0x600   :  { %v1008_v45 = vpop.permute.xlu0 %1007  ;;  %v855_v46 = vpop.permute.xlu1 %854 }
 0x601   :  { %v856_v47 = vmul.f32 %v3175_v25, %v855_v46  ;;  %v1009_v49 = vmul.f32 %v3184_v29, %v1008_v45 }
 0x603   :  { %2486 = vmatpush3.msra.mxu0 %v856_v47  ;;  %v2101_v47 = vld [vmem:[%s3512_s3 + $0x18] sm:$0xff] }
 0x604   :  { %2488 = vmatmul.mubr.msk.f32.vlgmr.msra.gmra.mrb[6].mxu0 %vm56_vm1, %v2086_v48  ;;  %2490 = vmatprep.subr.mxu0 %v3038_v1 }
 0x605   :  { %2491 = vmatpush3.msra.mxu0 %v1009_v49  ;;  %2492 = vmatprep.mubr.msk.f32.mxu0 %vm3039_vm0, %v3038_v1 }
 0x606   :  { %2855 = vmatprep.subr.bf16.mxu0 %v3040_v8 }
 0x60c   :  { %2493 = vmatmul.mubr.msk.f32.vlgmr.msra.gmra.mrb[6].mxu0 %vm56_vm1, %v2090_v50 }
 0x60d   :  { %2857 = vmatpush3.bf16.msra.mxu0 %v3102_v5  ;;  %2562 = vmatprep.mubr.msk.f32.mxu0 %vm3039_vm0, %v3038_v1 }
 0x60e   :  { %2858 = vmatprep.subr.bf16.mxu0 %v3040_v8 }
 0x611   :  { %2860 = vmatpush3.bf16.msra.mxu0 %v3115_v9 }
 0x612   :  { %2861 = vmatprep.subr.bf16.mxu0 %v3040_v8 }
 0x615   :  { %2863 = vmatpush3.bf16.msra.mxu0 %v3127_v12 }
 0x616   :  { %2864 = vmatprep.subr.bf16.mxu0 %v3040_v8 }
 0x619   :  { %2866 = vmatpush3.bf16.msra.mxu0 %v3137_v15 }
 0x61a   :  { %2867 = vmatprep.subr.bf16.mxu0 %v3040_v8 }
 0x61d   :  { %2869 = vmatpush3.bf16.msra.mxu0 %v3147_v18 }
 0x61e   :  { %2870 = vmatprep.subr.bf16.mxu0 %v3040_v8 }
 0x621   :  { %2872 = vmatpush3.bf16.msra.mxu0 %v3157_v21 }
 0x622   :  { %2873 = vmatprep.subr.bf16.mxu0 %v3040_v8 }
 0x625   :  { %2875 = vmatpush3.bf16.msra.mxu0 %v3167_v24 }
 0x626   :  { %2876 = vmatprep.subr.bf16.mxu0 %v3040_v8 }
 0x629   :  { %2878 = vmatpush3.bf16.msra.mxu0 %v3218_v35 }
 0x62a   :  { %2879 = vmatprep.subr.bf16.mxu0 %v3040_v8 }
 0x6df   :  { %v1081_v51 = vpop.f32.mrb[6].mxu0 }
 0x6e0   :  { %v1156_v52 = vmul.f32 %v1081_v51, %v1081_v51  ;;  %v2494_v53 = vpop.f32.mrb[7].mxu0  ;;  %2528 = vmatmul.mubr.f32.vlgmr.msra.gmra.mrb[8].mxu1 %v1081_v51 }
 0x6e1   :  { %2567 = vmatprep.mubr.msk.f32.mxu1 %vm3039_vm0, %v3038_v1 }
 0x6e2   :  { %2563 = vmatmul.mubr.f32.vlgmr.msra.gmra.mrb[8].mxu0 %v1156_v52 }
 0x6e3   :  { %2881 = vmatpush3.bf16.msra.mxu0 %v3102_v5  ;;  %2612 = vmatprep.mubr.msk.f32.mxu0 %vm3039_vm0, %v3038_v1 }
 0x6e4   :  { %2882 = vmatprep.subr.bf16.mxu0 %v3040_v8 }
 0x6e7   :  { %2884 = vmatpush3.bf16.msra.mxu0 %v3115_v9 }
 0x6e8   :  { %2885 = vmatprep.subr.bf16.mxu0 %v3040_v8 }
 0x6eb   :  { %2887 = vmatpush3.bf16.msra.mxu0 %v3127_v12 }
 0x6ec   :  { %2888 = vmatprep.subr.bf16.mxu0 %v3040_v8 }
 0x6ef   :  { %2890 = vmatpush3.bf16.msra.mxu0 %v3137_v15 }
 0x6f0   :  { %2891 = vmatprep.subr.bf16.mxu0 %v3040_v8 }
 0x6f3   :  { %2893 = vmatpush3.bf16.msra.mxu0 %v3147_v18 }
 0x6f4   :  { %2894 = vmatprep.subr.bf16.mxu0 %v3040_v8 }
 0x6f7   :  { %2896 = vmatpush3.bf16.msra.mxu0 %v3157_v21 }
 0x6f8   :  { %2897 = vmatprep.subr.bf16.mxu0 %v3040_v8 }
 0x6fb   :  { %2899 = vmatpush3.bf16.msra.mxu0 %v3167_v24 }
 0x6fc   :  { %2900 = vmatprep.subr.bf16.mxu0 %v3040_v8 }
 0x6ff   :  { %2902 = vmatpush3.bf16.msra.mxu0 %v3218_v35 }
 0x700   :  { %2650 = vmatprep.subr.mxu0 %v3038_v1 }
 0x7b3   :  { %v1152_v54 = vpop.f32.mrb[8].mxu1 }
 0x7b4   :  { %v1227_v55 = vmul.f32 0.03125, %v1152_v54  ;;  %v2529_v56 = vpop.f32.mrb[9].mxu1 }
 0x7b5   :  { %v1223_v57 = vpop.f32.mrb[8].mxu0 }
 0x7b6   :  { %v1229_v58 = vmul.f32 %v1227_v55, %v1227_v55  ;;  %v1228_v59 = vmul.f32 0.03125, %v1223_v57  ;;  %v2564_v60 = vpop.f32.mrb[9].mxu0 }
 0x7b8   :  { %v1230_v61 = vsub.f32 %v1228_v59, %v1229_v58  ;;  %v2102_v59 = vld [vmem:[%s3510_s1 + $0x60] sm:$0xff] }
 0x7ba   :  { %v1231_v62 = vmax.f32 %v1230_v61, 0.0 }
 0x7bc   :  { %v1234_v63 = vadd.f32 1e-05, %v1231_v62 }
 0x7be   :  { %3007 = vrsqrt.f32 %v1234_v63 }
 0x7c8   :  { %v3008_v3 = vpop.eup %3007 }
 0x7c9   :  { %v1236_v4 = vmul.f32 %v3008_v3, %v2092_v2 }
 0x7cb   :  { %1243 = vperm.xlu1 %3001, %v1236_v4   ;;  %v1239_v7 = vmul.f32 %v1236_v4, %v1227_v55  ;;  %v2103_v55 = vld [vmem:[%s3510_s1 + $0x68] sm:$0xff]  ;;  %v2109_v4 = vld [vmem:[%s3512_s3 + $0x20] sm:$0xff] }
 0x7cd   :  { %v1240_v10 = vsub.f32 %v2093_v6, %v1239_v7 }
 0x7cf   :  { %1249 = vperm.xlu0 %3002, %v1240_v10  }
 0x84a   :  { %v1244_v11 = vpop.permute.xlu1 %1243 }
 0x84b   :  { %v1246_v13 = vmul.f32 %v1244_v11, %v1081_v51 }
 0x84e   :  { %v1250_v14 = vpop.permute.xlu0 %1249 }
 0x84f   :  { %v1252_v16 = vadd.f32 %v1250_v14, %v1246_v13 }
 0x851   :  { %v1253_v17 = vmax.f32 %v1252_v16, 0.0 }
 0x853   :  { %1407 = vrot.lane.b32.xlu0 %v1253_v17, %s3041_s9  ;;  %1254 = vrot.lane.b32.xlu1 %v1253_v17, %s3037_s23 }
 0x854   :  { %2566 = vmatpush3.msra.mxu1 %v1253_v17 }
 0x855   :  { %2568 = vmatmul.mubr.msk.f32.vlgmr.msra.gmra.mrb[10].mxu1 %vm56_vm1, %v2095_v19  ;;  %2570 = vmatprep.subr.mxu1 %v3038_v1 }
 0x856   :  { %2572 = vmatprep.mubr.msk.f32.mxu1 %vm3039_vm0, %v3038_v1 }
 0x8c5   :  { %v1408_v20 = vpop.permute.xlu0 %1407  ;;  %v1255_v22 = vpop.permute.xlu1 %1254 }
 0x8c6   :  { %v1256_v23 = vmul.f32 %v3175_v25, %v1255_v22  ;;  %v1409_v27 = vmul.f32 %v3184_v29, %v1408_v20 }
 0x8c8   :  { %2571 = vmatpush3.msra.mxu1 %v1256_v23 }
 0x8c9   :  { %2573 = vmatmul.mubr.msk.f32.vlgmr.msra.gmra.mrb[10].mxu1 %vm56_vm1, %v2094_v26  ;;  %2575 = vmatprep.subr.mxu1 %v3038_v1 }
 0x8ca   :  { %2576 = vmatpush3.msra.mxu1 %v1409_v27  ;;  %2577 = vmatprep.mubr.msk.f32.mxu1 %vm3039_vm0, %v3038_v1 }
 0x8cb   :  { %2903 = vmatprep.subr.bf16.mxu1 %v3040_v8 }
 0x8d1   :  { %2578 = vmatmul.mubr.msk.f32.vlgmr.msra.gmra.mrb[10].mxu1 %vm56_vm1, %v2098_v28 }
 0x8d2   :  { %2905 = vmatpush3.bf16.msra.mxu1 %v3102_v5  ;;  %2647 = vmatprep.mubr.msk.f32.mxu1 %vm3039_vm0, %v3038_v1 }
 0x8d3   :  { %2906 = vmatprep.subr.bf16.mxu1 %v3040_v8 }
 0x8d6   :  { %2908 = vmatpush3.bf16.msra.mxu1 %v3115_v9 }
 0x8d7   :  { %2909 = vmatprep.subr.bf16.mxu1 %v3040_v8 }
 0x8da   :  { %2911 = vmatpush3.bf16.msra.mxu1 %v3127_v12 }
 0x8db   :  { %2912 = vmatprep.subr.bf16.mxu1 %v3040_v8 }
 0x8de   :  { %2914 = vmatpush3.bf16.msra.mxu1 %v3137_v15 }
 0x8df   :  { %2915 = vmatprep.subr.bf16.mxu1 %v3040_v8 }
 0x8e2   :  { %2917 = vmatpush3.bf16.msra.mxu1 %v3147_v18 }
 0x8e3   :  { %2918 = vmatprep.subr.bf16.mxu1 %v3040_v8 }
 0x8e6   :  { %2920 = vmatpush3.bf16.msra.mxu1 %v3157_v21 }
 0x8e7   :  { %2921 = vmatprep.subr.bf16.mxu1 %v3040_v8 }
 0x8ea   :  { %2923 = vmatpush3.bf16.msra.mxu1 %v3167_v24 }
 0x8eb   :  { %2924 = vmatprep.subr.bf16.mxu1 %v3040_v8 }
 0x8ee   :  { %2926 = vmatpush3.bf16.msra.mxu1 %v3218_v35 }
 0x8ef   :  { %2927 = vmatprep.subr.bf16.mxu1 %v3040_v8 }
 0x9a4   :  { %v1481_v30 = vpop.f32.mrb[10].mxu1 }
 0x9a5   :  { %v1556_v31 = vmul.f32 %v1481_v30, %v1481_v30  ;;  %v2579_v32 = vpop.f32.mrb[11].mxu1  ;;  %2613 = vmatmul.mubr.f32.vlgmr.msra.gmra.mrb[10].mxu0 %v1481_v30 }
 0x9a6   :  { %2652 = vmatprep.mubr.msk.f32.mxu0 %vm3039_vm0, %v3038_v1 }
 0x9a7   :  { %2648 = vmatmul.mubr.f32.vlgmr.msra.gmra.mrb[12].mxu1 %v1556_v31 }
 0x9a8   :  { %2929 = vmatpush3.bf16.msra.mxu1 %v3102_v5  ;;  %2697 = vmatprep.mubr.msk.f32.mxu1 %vm3039_vm0, %v3038_v1 }
 0x9a9   :  { %2930 = vmatprep.subr.bf16.mxu1 %v3040_v8 }
 0x9ac   :  { %2932 = vmatpush3.bf16.msra.mxu1 %v3115_v9 }
 0x9ad   :  { %2933 = vmatprep.subr.bf16.mxu1 %v3040_v8 }
 0x9b0   :  { %2935 = vmatpush3.bf16.msra.mxu1 %v3127_v12 }
 0x9b1   :  { %2936 = vmatprep.subr.bf16.mxu1 %v3040_v8 }
 0x9b4   :  { %2938 = vmatpush3.bf16.msra.mxu1 %v3137_v15 }
 0x9b5   :  { %2939 = vmatprep.subr.bf16.mxu1 %v3040_v8 }
 0x9b8   :  { %2941 = vmatpush3.bf16.msra.mxu1 %v3147_v18 }
 0x9b9   :  { %2942 = vmatprep.subr.bf16.mxu1 %v3040_v8 }
 0x9bc   :  { %2944 = vmatpush3.bf16.msra.mxu1 %v3157_v21 }
 0x9bd   :  { %2945 = vmatprep.subr.bf16.mxu1 %v3040_v8 }
 0x9c0   :  { %2947 = vmatpush3.bf16.msra.mxu1 %v3167_v24 }
 0x9c1   :  { %2948 = vmatprep.subr.bf16.mxu1 %v3040_v8 }
 0x9c4   :  { %2950 = vmatpush3.bf16.msra.mxu1 %v3218_v35 }
 0xa78   :  { %v1552_v33 = vpop.f32.mrb[10].mxu0 }
 0xa79   :  { %v1627_v34 = vmul.f32 0.03125, %v1552_v33  ;;  %v2614_v36 = vpop.f32.mrb[11].mxu0 }
 0xa7a   :  { %v1623_v37 = vpop.f32.mrb[12].mxu1 }
 0xa7b   :  { %v1629_v38 = vmul.f32 %v1627_v34, %v1627_v34  ;;  %v1628_v39 = vmul.f32 0.03125, %v1623_v37  ;;  %v2649_v40 = vpop.f32.mrb[13].mxu1 }
 0xa7d   :  { %v1630_v41 = vsub.f32 %v1628_v39, %v1629_v38 }
 0xa7f   :  { %v1631_v42 = vmax.f32 %v1630_v41, 0.0 }
 0xa81   :  { %v1634_v43 = vadd.f32 1e-05, %v1631_v42 }
 0xa83   :  { %3009 = vrsqrt.f32 %v1634_v43 }
 0xa8d   :  { %v3010_v45 = vpop.eup %3009 }
 0xa8e   :  { %v1636_v46 = vmul.f32 %v3010_v45, %v2100_v44 }
 0xa90   :  { %1643 = vperm.xlu1 %3001, %v1636_v46   ;;  %v1639_v48 = vmul.f32 %v1636_v46, %v1627_v34 }
 0xa92   :  { %v1640_v49 = vsub.f32 %v2101_v47, %v1639_v48 }
 0xa94   :  { %1649 = vperm.xlu0 %3002, %v1640_v49  }
 0xb0f   :  { %v1644_v50 = vpop.permute.xlu1 %1643 }
 0xb10   :  { %v1646_v51 = vmul.f32 %v1644_v50, %v1481_v30 }
 0xb13   :  { %v1650_v52 = vpop.permute.xlu0 %1649 }
 0xb14   :  { %v1652_v53 = vadd.f32 %v1650_v52, %v1646_v51 }
 0xb16   :  { %v1653_v54 = vmax.f32 %v1652_v53, 0.0 }
 0xb18   :  { %1807 = vrot.lane.b32.xlu0 %v1653_v54, %s3041_s9  ;;  %1654 = vrot.lane.b32.xlu1 %v1653_v54, %s3037_s23 }
 0xb19   :  { %2651 = vmatpush3.msra.mxu0 %v1653_v54 }
 0xb1a   :  { %2653 = vmatmul.mubr.msk.f32.vlgmr.msra.gmra.mrb[12].mxu0 %vm56_vm1, %v2103_v55  ;;  %2655 = vmatprep.subr.mxu0 %v3038_v1 }
 0xb1b   :  { %2657 = vmatprep.mubr.msk.f32.mxu0 %vm3039_vm0, %v3038_v1 }
 0xb8a   :  { %v1808_v56 = vpop.permute.xlu0 %1807  ;;  %v1655_v57 = vpop.permute.xlu1 %1654 }
 0xb8b   :  { %v1656_v58 = vmul.f32 %v3175_v25, %v1655_v57  ;;  %v1809_v60 = vmul.f32 %v3184_v29, %v1808_v56  ;;  %v2106_v25 = vld [vmem:[%s3510_s1 + $0x70] sm:$0xff] }
 0xb8d   :  { %2656 = vmatpush3.msra.mxu0 %v1656_v58 }
 0xb8e   :  { %2658 = vmatmul.mubr.msk.f32.vlgmr.msra.gmra.mrb[12].mxu0 %vm56_vm1, %v2102_v59  ;;  %2660 = vmatprep.subr.mxu0 %v3038_v1 }
 0xb8f   :  { %2661 = vmatpush3.msra.mxu0 %v1809_v60  ;;  %2662 = vmatprep.mubr.msk.f32.mxu0 %vm3039_vm0, %v3038_v1 }
 0xb90   :  { %2951 = vmatprep.subr.bf16.mxu0 %v3040_v8 }
 0xb96   :  { %2663 = vmatmul.mubr.msk.f32.vlgmr.msra.gmra.mrb[12].mxu0 %vm56_vm1, %v2106_v25 }
 0xb97   :  { %2953 = vmatpush3.bf16.msra.mxu0 %v3102_v5  ;;  %2732 = vmatprep.mubr.msk.f32.mxu0 %vm3039_vm0, %v3038_v1 }
 0xb98   :  { %2954 = vmatprep.subr.bf16.mxu0 %v3040_v8 }
 0xb9b   :  { %2956 = vmatpush3.bf16.msra.mxu0 %v3115_v9 }
 0xb9c   :  { %2957 = vmatprep.subr.bf16.mxu0 %v3040_v8 }
 0xb9f   :  { %2959 = vmatpush3.bf16.msra.mxu0 %v3127_v12 }
 0xba0   :  { %2960 = vmatprep.subr.bf16.mxu0 %v3040_v8 }
 0xba3   :  { %2962 = vmatpush3.bf16.msra.mxu0 %v3137_v15 }
 0xba4   :  { %2963 = vmatprep.subr.bf16.mxu0 %v3040_v8 }
 0xba7   :  { %2965 = vmatpush3.bf16.msra.mxu0 %v3147_v18 }
 0xba8   :  { %2966 = vmatprep.subr.bf16.mxu0 %v3040_v8 }
 0xbab   :  { %2968 = vmatpush3.bf16.msra.mxu0 %v3157_v21 }
 0xbac   :  { %2969 = vmatprep.subr.bf16.mxu0 %v3040_v8 }
 0xbaf   :  { %2971 = vmatpush3.bf16.msra.mxu0 %v3167_v24 }
 0xbb0   :  { %2972 = vmatprep.subr.bf16.mxu0 %v3040_v8  ;;  %v2108_v8 = vld [vmem:[%s3511_s2 + $0x20] sm:$0xff]  ;;  %s3013_s2 = scalar_lea.vmem %s2063_s11, 128 }
 0xbb1   :  { %p3014_p0 = scmp.ne.s32.totalorder %s2063_s11, %s3013_s2  ;;  %p3019_p2 = scmp.lt.s32.totalorder %s3013_s2, %s3013_s2 }
 0xbb3   :  { %2974 = vmatpush3.bf16.msra.mxu0 %v3218_v35  ;;  %p3020_p3 = por %p3019_p2, %p3018_p1 }
 0xbb5   :  { %p3021_p4 = pnand %p3020_p3, %p3014_p0 }
 0xc69   :  { %v1881_v1 = vpop.f32.mrb[12].mxu0 }
 0xc6a   :  { %v1956_v5 = vmul.f32 %v1881_v1, %v1881_v1  ;;  %v2664_v9 = vpop.f32.mrb[13].mxu0  ;;  %2698 = vmatmul.mubr.f32.vlgmr.msra.gmra.mrb[14].mxu1 %v1881_v1 }
 0xc6c   :  { %2733 = vmatmul.mubr.f32.vlgmr.msra.gmra.mrb[14].mxu0 %v1956_v5 }
 0xd3d   :  { %v1952_v12 = vpop.f32.mrb[14].mxu1 }
 0xd3e   :  { %v2027_v15 = vmul.f32 0.03125, %v1952_v12  ;;  %v2699_v18 = vpop.f32.mrb[15].mxu1 }
 0xd3f   :  { %v2023_v29 = vpop.f32.mrb[14].mxu0 }
 0xd40   :  { %v2029_v61 = vmul.f32 %v2027_v15, %v2027_v15  ;;  %v2028_v62 = vmul.f32 0.03125, %v2023_v29  ;;  %v2734_v21 = vpop.f32.mrb[15].mxu0 }
 0xd42   :  { %v2030_v63 = vsub.f32 %v2028_v62, %v2029_v61 }
 0xd44   :  { %v2031_v2 = vmax.f32 %v2030_v63, 0.0 }
 0xd46   :  { %v2034_v3 = vadd.f32 1e-05, %v2031_v2 }
 0xd48   :  { %3011 = vrsqrt.f32 %v2034_v3 }
 0xd52   :  { %v3012_v24 = vpop.eup %3011 }
 0xd53   :  { %v2036_v35 = vmul.f32 %v3012_v24, %v2108_v8 }
 0xd55   :  { %2043 = vperm.xlu1 %3001, %v2036_v35   ;;  %v2039_v6 = vmul.f32 %v2036_v35, %v2027_v15 }
 0xd57   :  { %v2040_v7 = vsub.f32 %v2109_v4, %v2039_v6 }
 0xd59   :  { %2049 = vperm.xlu0 %3002, %v2040_v7  }
 0xdd4   :  { %v2044_v10 = vpop.permute.xlu1 %2043 }
 0xdd5   :  { %v2046_v11 = vmul.f32 %v2044_v10, %v1881_v1 }
 0xdd8   :  { %v2050_v13 = vpop.permute.xlu0 %2049 }
 0xdd9   :  { %v2052_v14 = vadd.f32 %v2050_v13, %v2046_v11 }
 0xddb   :  { %v2053_v16 = vmax.f32 %v2052_v14, 0.0 }
 0xddd   :  { %v2054_v17 = vadd.f32 %v2053_v16, %v3082_v0 }
 0xddf   :  { %2055 = vst [vmem:[#allocation2] sm:$0xff] %v2054_v17 }
 0xde0   :  { %3024 = shalt.err (!%p3021_p4)
}
 0xde1   :  { %s3025_s13 = scalar_lea.hbm %s3515_s6, 128 }
 0xde2   :  { %p3026_p5 = scmp.ne.s32.totalorder %s3515_s6, %s3025_s13  ;;  %p3029_p6 = scmp.lt.u32.totalorder %s3025_s13, %s3515_s6 }
 0xde4   :  { %p3031_p7 = pnand %p3029_p6, %p3026_p5 }
 0xde6   :  { %3034 = shalt.err (!%p3031_p7)
}
 0xde7   :  { %2065 = dma.vmem_to_hbm [thread:$0]  %s2063_s11, 128, %s3515_s6, [#allocation3]  }
 0xde8   :  { %3035 = dma.done.wait [#allocation3], 128  }
 0xde9   :  { %3036 = vsyncadd [#allocation3], 4294967168 }
 0xdea   :  { %2069 = vsyncpa [#allocation3], 1 }

</bundles_post_ra>
